<compile_context>
chip_gen: v7x
topology: tpu7x:2x2x1
jax: 0.10.0
libtpu: 0.0.40
codegen_flags: <defaults>
</compile_context>

<pallas_src>
import math

import jax
import jax.numpy as jnp
from jax.experimental import pallas as pl
from jax.experimental.pallas import tpu as pltpu


# ---------------------------------------------------------------------------
# Kernel
# ---------------------------------------------------------------------------
def _discriminator_kernel(x_ref, y_ref, w_ref, b_ref, o_ref, sx_ref, acc_ref):
    # x_ref  : (tm, H)   prior_enc batch tile (f32); same block for every j
    # y_ref  : (tm, tn)  poster_enc column tile (f32)
    # w_ref  : (H, tn)   bilinear weight tile (bf16), streamed over j
    # b_ref  : (1, 1)    bias in SMEM
    # o_ref  : (tm, 1)   sigmoid scores for this batch tile
    # sx_ref : (tm, H)   cached sigmoid(prior) (f32 scratch)
    # acc_ref: (tm, 1)   f32 partial bilinear-score accumulator (scratch)
    j = pl.program_id(1)
    nj = pl.num_programs(1)

    @pl.when(j == 0)
    def _init():
        sx_ref[...] = jax.nn.sigmoid(x_ref[...])
        acc_ref[...] = jnp.zeros_like(acc_ref)

    sy = jax.nn.sigmoid(y_ref[...])                          # (tm, tn) f32

    # Weight stays bf16 in HBM/VMEM (half the HBM traffic); up-cast here so the
    # matmul is f32 x f32 -> f32 on every backend.
    w = w_ref[...].astype(jnp.float32)                       # (H, tn)
    t = jnp.dot(sx_ref[...], w,
                preferred_element_type=jnp.float32)          # (tm, tn)

    # Partial bilinear score for this weight-column tile.
    acc_ref[...] += jnp.sum(t * sy, axis=1, keepdims=True)   # (tm, 1)

    @pl.when(j == nj - 1)
    def _finalize():
        score = acc_ref[...] + b_ref[0, 0]
        o_ref[...] = jax.nn.sigmoid(score).astype(o_ref.dtype)


# ---------------------------------------------------------------------------
# Tiling / VMEM helpers
# ---------------------------------------------------------------------------
def _vmem_capacity_bytes():
    # Per-core VMEM: 128 MiB on v5e/v6e, 64 MiB on v7x.  Fall back to the
    # conservative 64 MiB if the query is unavailable (e.g. interpret mode).
    try:
        return int(pltpu.get_tpu_info().vmem_capacity_bytes)
    except Exception:
        return 64 << 20


def _resident_bytes(tm, tn, H):
    # Double-buffered pipelined inputs/outputs + persistent scratch.
    return (2 * tm * H * 4        # prior (f32) blocks
            + 2 * tm * tn * 4     # poster (f32) blocks
            + 2 * H * tn * 2      # weight (bf16) blocks
            + 2 * tm * 4          # output blocks
            + tm * H * 4          # sigmoid(prior) cache (scratch)
            + tm * 4)             # score accumulator (scratch)


def _choose_tiles(B, H, budget_bytes):
    # Weight-column tile (streamed reduction axis): largest 128-multiple
    # dividing H, else the full dimension (legal full-extent block).
    tn = next((c for c in (512, 256, 128) if H % c == 0), H)
    # Batch tile: prefer the full batch (gb == 1 -> W streamed exactly once);
    # fall back to smaller divisors only if the VMEM budget does not allow it.
    candidates = [B] + [c for c in (2048, 1024, 512, 256, 128, 64, 32, 16, 8)
                        if c < B and B % c == 0]
    for tm in candidates:
        if _resident_bytes(tm, tn, H) <= budget_bytes:
            return tm, tn
    return (8 if B % 8 == 0 else B), tn


# ---------------------------------------------------------------------------
# Wrapper
# ---------------------------------------------------------------------------
@jax.jit
def discriminator_forward(prior_enc, poster_enc, weight, bias):
    """prior_enc, poster_enc: (B, H); weight: (H, H) (f32 or bf16); bias scalar.

    Returns sigmoid(bilinear(sigmoid(prior), sigmoid(poster)) + bias): (B,).
    """
    B, H = prior_enc.shape

    cap = _vmem_capacity_bytes()
    tm, tn = _choose_tiles(B, H, int(0.70 * cap))
    gb, gj = B // tm, H // tn

    x = prior_enc.astype(jnp.float32)
    y = poster_enc.astype(jnp.float32)
    w = weight.astype(jnp.bfloat16)        # no-op when pre-cast in param prep
    b = jnp.reshape(bias, (1, 1)).astype(jnp.float32)

    resident = _resident_bytes(tm, tn, H)
    vmem_limit = int(min(int(0.75 * cap), 1.25 * resident + (4 << 20)))

    cost = pl.CostEstimate(
        flops=2 * B * H * H + 3 * B * H,
        transcendentals=2 * B * H + B,
        # W is read gb times (once when gb == 1), activations once, output once.
        bytes_accessed=gb * H * H * 2 + 2 * B * H * 4 + B * 4,
    )

    out = pl.pallas_call(
        _discriminator_kernel,
        out_shape=jax.ShapeDtypeStruct((B, 1), jnp.float32),
        grid_spec=pltpu.PrefetchScalarGridSpec(
            num_scalar_prefetch=0,
            grid=(gb, gj),
            in_specs=[
                pl.BlockSpec((tm, H), lambda bb, j: (bb, 0)),   # prior (B, H)
                pl.BlockSpec((tm, tn), lambda bb, j: (bb, j)),  # poster (B, H)
                pl.BlockSpec((H, tn), lambda bb, j: (0, j)),    # W (H, H), streamed
                pl.BlockSpec(memory_space=pltpu.SMEM),          # bias (1, 1)
            ],
            out_specs=pl.BlockSpec((tm, 1), lambda bb, j: (bb, 0)),
            scratch_shapes=[
                pltpu.VMEM((tm, H), jnp.float32),   # sigmoid(prior) cache
                pltpu.VMEM((tm, 1), jnp.float32),   # score accumulator
            ],
        ),
        compiler_params=pltpu.CompilerParams(
            dimension_semantics=("parallel", "arbitrary"),
            vmem_limit_bytes=vmem_limit,
        ),
        cost_estimate=cost,
    )(x, y, w, b)

    return out[:, 0]


def init_discriminator_params(key, hidden_size):
    """Deterministic xavier_uniform init matching nn.Bilinear(H, H, 1)."""
    # torch weight shape: (1, H, H); fan_in = H*H, fan_out = 1*H
    fan_in = hidden_size * hidden_size
    fan_out = 1 * hidden_size
    bound = math.sqrt(6.0 / (fan_in + fan_out))
    w = jax.random.uniform(key, (hidden_size, hidden_size),
                           dtype=jnp.float32, minval=-bound, maxval=bound)
    b = jnp.zeros((), dtype=jnp.float32)  # bias.fill_(0.0)
    return w, b


if __name__ == "__main__":
    def run_case(case_key, B, H):
        k_w, k_x, k_y = jax.random.split(case_key, 3)
        weight, bias = init_discriminator_params(k_w, H)
        # Hoist the one-time bf16 weight cast out of the per-call hot path.
        w_bf16 = weight.astype(jnp.bfloat16)
        prior_enc = jax.random.normal(k_x, (B, H), dtype=jnp.float32)
        poster_enc = jax.random.normal(k_y, (B, H), dtype=jnp.float32)

        score = jax.block_until_ready(
            discriminator_forward(prior_enc, poster_enc, w_bf16, bias))
        assert score.shape == (B,)

        sx = jax.nn.sigmoid(prior_enc)
        sy = jax.nn.sigmoid(poster_enc)

        # Full f32 reference (kernel quantizes only W to bf16 -> loose tol).
        ref32 = jax.nn.sigmoid(
            jnp.einsum("bi,ij,bj->b", sx, weight, sy,
                       precision=jax.lax.Precision.HIGHEST) + bias)
        assert jnp.allclose(score, ref32, atol=2e-2), (score, ref32)

        # bf16-weight-matched reference (tight tol; activations stay f32).
        w_deq = weight.astype(jnp.bfloat16).astype(jnp.float32)
        t = jnp.dot(sx, w_deq, precision=jax.lax.Precision.HIGHEST)
        ref_bf = jax.nn.sigmoid(jnp.sum(t * sy, axis=-1) + bias)
        assert jnp.allclose(score, ref_bf, atol=5e-3), (score, ref_bf)

    key = jax.random.PRNGKey(0)
    k1, k2 = jax.random.split(key)
    run_case(k1, 8, 32)      # toy shape implied by the module (hidden=32)
    run_case(k2, 128, 1024)  # exercises streamed W (gj=2) with gb=1 (W read once)

    print("KERNEL_OK")
</pallas_src>

<mosaic_0001>
module attributes {stable_mosaic.version = 11 : i64} {
  func.func @_discriminator_kernel(%arg0: i32, %arg1: i32, %arg2: memref<8x32xf32, #tpu.memory_space<vmem>>, %arg3: memref<8x32xf32, #tpu.memory_space<vmem>>, %arg4: memref<32x32xbf16, #tpu.memory_space<vmem>>, %arg5: memref<1x1xf32, #tpu.memory_space<smem>>, %arg6: memref<8x1xf32, #tpu.memory_space<vmem>>, %arg7: memref<8x32xf32, #tpu.memory_space<vmem>>, %arg8: memref<8x1xf32, #tpu.memory_space<vmem>>) attributes {dimension_semantics = [#tpu.dimension_semantics<parallel>, #tpu.dimension_semantics<arbitrary>], iteration_bounds = array<i64: 1, 1>, scalar_prefetch = 0 : i64, scratch_operands = 2 : i64, tpu.core_type = #tpu.core_type<tc>, window_params = [{transform_indices = @transform_0, window_bounds = array<i64: 8, 32>}, {transform_indices = @transform_1, window_bounds = array<i64: 8, 32>}, {transform_indices = @transform_2, window_bounds = array<i64: 32, 32>}, {transform_indices = @transform_3, window_bounds = array<i64: 1, 1>}, {transform_indices = @transform_4, window_bounds = array<i64: 8, 1>}]} {
    %c0_i32 = arith.constant 0 : i32
    %0 = arith.cmpi eq, %arg1, %c0_i32 : i32
    %1 = arith.extui %0 : i1 to i32
    %c0_i32_0 = arith.constant 0 : i32
    %2 = arith.cmpi ne, %1, %c0_i32_0 : i32
    scf.if %2 {
      %c0_14 = arith.constant 0 : index
      %c0_15 = arith.constant 0 : index
      %22 = vector.load %arg2[%c0_14, %c0_15] : memref<8x32xf32, #tpu.memory_space<vmem>>, vector<8x32xf32>
      %23 = arith.negf %22 : vector<8x32xf32>
      %24 = math.exp %23 : vector<8x32xf32>
      %cst_16 = arith.constant 1.000000e+00 : f32
      %25 = vector.broadcast %cst_16 : f32 to vector<8x32xf32>
      %26 = arith.addf %25, %24 : vector<8x32xf32>
      %27 = arith.divf %25, %26 : vector<8x32xf32>
      %c0_17 = arith.constant 0 : index
      %c0_18 = arith.constant 0 : index
      %28 = vector.load %arg7[%c0_17, %c0_18] : memref<8x32xf32, #tpu.memory_space<vmem>>, vector<8x32xf32>
      tpu.vector_store %arg7[%c0_17, %c0_18], %27 {strides = array<i32>} : memref<8x32xf32, #tpu.memory_space<vmem>>, vector<8x32xf32>,
      %cst_19 = arith.constant 0.000000e+00 : f32
      %29 = vector.broadcast %cst_19 : f32 to vector<8x1xf32>
      %c0_20 = arith.constant 0 : index
      %c0_21 = arith.constant 0 : index
      %30 = vector.load %arg8[%c0_20, %c0_21] : memref<8x1xf32, #tpu.memory_space<vmem>>, vector<8x1xf32>
      tpu.vector_store %arg8[%c0_20, %c0_21], %29 {strides = array<i32>} : memref<8x1xf32, #tpu.memory_space<vmem>>, vector<8x1xf32>,
    } else {
    }
    %c0 = arith.constant 0 : index
    %c0_1 = arith.constant 0 : index
    %3 = vector.load %arg3[%c0, %c0_1] : memref<8x32xf32, #tpu.memory_space<vmem>>, vector<8x32xf32>
    %4 = arith.negf %3 : vector<8x32xf32>
    %5 = math.exp %4 : vector<8x32xf32>
    %cst = arith.constant 1.000000e+00 : f32
    %6 = vector.broadcast %cst : f32 to vector<8x32xf32>
    %7 = arith.addf %6, %5 : vector<8x32xf32>
    %8 = arith.divf %6, %7 : vector<8x32xf32>
    %c0_2 = arith.constant 0 : index
    %c0_3 = arith.constant 0 : index
    %9 = vector.load %arg4[%c0_2, %c0_3] : memref<32x32xbf16, #tpu.memory_space<vmem>>, vector<32x32xbf16>
    %10 = arith.extf %9 : vector<32x32xbf16> to vector<32x32xf32>
    %c0_4 = arith.constant 0 : index
    %c0_5 = arith.constant 0 : index
    %11 = vector.load %arg7[%c0_4, %c0_5] : memref<8x32xf32, #tpu.memory_space<vmem>>, vector<8x32xf32>
    %cst_6 = arith.constant dense<0.000000e+00> : vector<8x32xf32>
    %12 = tpu.matmul %11, %10, %cst_6 {dimension_numbers = #tpu.dot_dimension_numbers<[1], [0], [0], [1], [0, 0, 1, 1], [], []>} : vector<8x32xf32>, vector<32x32xf32>, vector<8x32xf32> -> vector<8x32xf32>
    %c0_7 = arith.constant 0 : index
    %c0_8 = arith.constant 0 : index
    %13 = vector.load %arg8[%c0_7, %c0_8] : memref<8x1xf32, #tpu.memory_space<vmem>>, vector<8x1xf32>
    %14 = arith.mulf %12, %8 : vector<8x32xf32>
    %cst_9 = arith.constant dense<0.000000e+00> : vector<8xf32>
    %15 = vector.multi_reduction <add>, %14, %cst_9 [1] : vector<8x32xf32> to vector<8xf32>
    %16 = vector.shape_cast %15 : vector<8xf32> to vector<8x1xf32>
    %17 = arith.addf %13, %16 : vector<8x1xf32>
    %c0_10 = arith.constant 0 : index
    %c0_11 = arith.constant 0 : index
    %18 = vector.load %arg8[%c0_10, %c0_11] : memref<8x1xf32, #tpu.memory_space<vmem>>, vector<8x1xf32>
    tpu.vector_store %arg8[%c0_10, %c0_11], %17 {strides = array<i32>} : memref<8x1xf32, #tpu.memory_space<vmem>>, vector<8x1xf32>,
    %c0_i32_12 = arith.constant 0 : i32
    %19 = arith.cmpi eq, %arg1, %c0_i32_12 : i32
    %20 = arith.extui %19 : i1 to i32
    %c0_i32_13 = arith.constant 0 : i32
    %21 = arith.cmpi ne, %20, %c0_i32_13 : i32
    scf.if %21 {
      %c0_14 = arith.constant 0 : index
      %c0_15 = arith.constant 0 : index
      %22 = vector.load %arg8[%c0_14, %c0_15] : memref<8x1xf32, #tpu.memory_space<vmem>>, vector<8x1xf32>
      %c0_16 = arith.constant 0 : index
      %c0_17 = arith.constant 0 : index
      %23 = memref.load %arg5[%c0_16, %c0_17] : memref<1x1xf32, #tpu.memory_space<smem>>
      %24 = vector.broadcast %23 : f32 to vector<8x1xf32>
      %25 = arith.addf %22, %24 : vector<8x1xf32>
      %26 = arith.negf %25 : vector<8x1xf32>
      %27 = math.exp %26 : vector<8x1xf32>
      %cst_18 = arith.constant 1.000000e+00 : f32
      %28 = vector.broadcast %cst_18 : f32 to vector<8x1xf32>
      %29 = arith.addf %28, %27 : vector<8x1xf32>
      %30 = arith.divf %28, %29 : vector<8x1xf32>
      %c0_19 = arith.constant 0 : index
      %c0_20 = arith.constant 0 : index
      %31 = vector.load %arg6[%c0_19, %c0_20] : memref<8x1xf32, #tpu.memory_space<vmem>>, vector<8x1xf32>
      tpu.vector_store %arg6[%c0_19, %c0_20], %30 {strides = array<i32>} : memref<8x1xf32, #tpu.memory_space<vmem>>, vector<8x1xf32>,
    } else {
    }
    return
  }
  func.func @transform_0(%arg0: i32, %arg1: i32) -> (i32, i32) {
    %c0_i32 = arith.constant 0 : i32
    %c0_i32_0 = arith.constant 0 : i32
    return %arg0, %c0_i32 : i32, i32
  }
  func.func @transform_1(%arg0: i32, %arg1: i32) -> (i32, i32) {
    %c0_i32 = arith.constant 0 : i32
    return %arg0, %arg1 : i32, i32
  }
  func.func @transform_2(%arg0: i32, %arg1: i32) -> (i32, i32) {
    %c0_i32 = arith.constant 0 : i32
    %c0_i32_0 = arith.constant 0 : i32
    return %c0_i32, %arg1 : i32, i32
  }
  func.func @transform_3(%arg0: i32, %arg1: i32) -> (i32, i32) {
    %c0_i32 = arith.constant 0 : i32
    %c0_i32_0 = arith.constant 0 : i32
    %c0_i32_1 = arith.constant 0 : i32
    return %c0_i32, %c0_i32_0 : i32, i32
  }
  func.func @transform_4(%arg0: i32, %arg1: i32) -> (i32, i32) {
    %c0_i32 = arith.constant 0 : i32
    %c0_i32_0 = arith.constant 0 : i32
    return %arg0, %c0_i32 : i32, i32
  }
}

</mosaic_0001>

<bundles_post_ra>
// kernel: discriminator_forward.1
= control target key start
LH: loop header
LB: loop body
LE: loop exit
PB: predicated region body
PF: predicated region fallthrough
CT: control target
= control target key end

     0   :  { %10 = vsyncpa [#allocation6], 0  ;;  %s354_s0 = inlined_call_operand.hbm [shape: f32[8,32], index: 0, kind: input, shape index: {}]   ;;  %s355_s1 = inlined_call_operand.vmem [shape: f32[8,32], index: 1, kind: input, shape index: {}]   ;;  %s356_s2 = inlined_call_operand.hbm [shape: bf16[32,32], index: 2, kind: input, shape index: {}]   ;;  %s357_s3 = inlined_call_operand.<no memory space> [shape: f32[1,1], index: 3, kind: input, shape index: {}]   ;;  %s358_s4 = inlined_call_operand.vmem [shape: f32[8,1], index: 4, kind: output, shape index: {}]  }
   0x1   :  { %11 = vsyncpa [#allocation8], 0  ;;  %s279_s15 = smov [#allocation5]   ;;  %s280_s17 = smov [#allocation7]  }
   0x2   :  { %s18_s16 = sshll.u32 %s279_s15, 4  ;;  %s29_s18 = sshll.u32 %s280_s17, 4  ;;  %s19_s16 = int_to_ptr.vmem [resolvable:$true] %s18_s16  ;;  %s311_s18 = int_to_ptr.vmem [resolvable:$true] %s29_s18 }
   0x3   :  { %s231_s21 = scalar_lea.hbm %s354_s0, 128 }
   0x4   :  { %p232_p0 = scmp.ne.s32.totalorder %s354_s0, %s231_s21  ;;  %p235_p1 = scmp.lt.u32.totalorder %s231_s21, %s354_s0 }
   0x6   :  { %p237_p2 = pnand %p235_p1, %p232_p0 }
   0x8   :  { %240 = shalt.err (!%p237_p2)
}
   0x9   :  { %s241_s26 = scalar_lea.vmem %s19_s16, 128  ;;  %p246_p4 = scmp.lt.s32.totalorder %s19_s16, %s19_s16 }
   0xa   :  { %p242_p3 = scmp.ne.s32.totalorder %s19_s16, %s241_s26  ;;  %p247_p5 = scmp.lt.s32.totalorder %s241_s26, %s241_s26 }
   0xc   :  { %p248_p6 = por %p247_p5, %p246_p4 }
   0xe   :  { %p249_p7 = pnand %p248_p6, %p242_p3 }
  0x10   :  { %252 = shalt.err (!%p249_p7)
}
  0x11   :  { %21 = dma.hbm_to_vmem [thread:$0]  %s354_s0, 128, %s19_s16, [#allocation6]  }
  0x12   :  { %s253_s5 = scalar_lea.hbm %s356_s2, 256 }
  0x13   :  { %p254_p8 = scmp.ne.s32.totalorder %s356_s2, %s253_s5  ;;  %p257_p9 = scmp.lt.u32.totalorder %s253_s5, %s356_s2 }
  0x15   :  { %p259_p10 = pnand %p257_p9, %p254_p8 }
  0x17   :  { %262 = shalt.err (!%p259_p10)
}
  0x18   :  { %s263_s10 = scalar_lea.vmem %s311_s18, 256  ;;  %p268_p12 = scmp.lt.s32.totalorder %s311_s18, %s311_s18 }
  0x19   :  { %p264_p11 = scmp.ne.s32.totalorder %s311_s18, %s263_s10  ;;  %p269_p13 = scmp.lt.s32.totalorder %s263_s10, %s263_s10 }
  0x1b   :  { %p270_p0 = por %p269_p13, %p268_p12 }
  0x1d   :  { %p271_p1 = pnand %p270_p0, %p264_p11 }
  0x1f   :  { %274 = shalt.err (!%p271_p1)
}
  0x20   :  { %s281_s0 = smov 64   ;;  %s282_s11 = smov 4  }
  0x21   :  { %35 = dma.hbm_to_vmem [thread:$0]  %s356_s2, 256, %s311_s18, [#allocation8], %s281_s0, %s281_s0, %s282_s11  }
  0x22   :  { %275 = dma.done.wait [#allocation6], 128  }
  0x23   :  { %276 = vsyncadd [#allocation6], 4294967168 }
  0x24   :  { %277 = dma.done.wait [#allocation8], 256  }
  0x25   :  { %278 = vsyncadd [#allocation8], 4294967040  ;;  %vm57_vm0 = vcmask 7168   ;;  %v283_v0 = vmov 0.0|0.0   ;;  %v284_v1 = vmov 0.0   ;;  %vm285_vm1 = vmmov 0  }
  0x26   :  { %206 = vmatprep.subr.bf16.mxu0 %v283_v0  ;;  %58 = vst.msk [vmem:[#allocation3] sm:$0xff] %vm57_vm0, %v284_v1  ;;  %203 = vmatprep.mubr.msk.f32.mxu0 %vm285_vm1, %v284_v1  ;;  %v182_v2 = vld [vmem:[#allocation7] sm:$0xff]   ;;  %v48_v3 = vld [vmem:[#allocation5] sm:$0xff]  ;;  %v189_v5 = vld [vmem:[#allocation7 + $0x8] sm:$0xff]   ;;  %vm55_vm2 = vcmask 261120   ;;  %v162_v22 = vstv %s357_s3 }
  0x27   :  { %208 = vmatpush3.bf16.msra.mxu0 %v182_v2  ;;  %v177_v4 = vmul.f32 -1.442695, %v48_v3  ;;  %v59_v10 = vld [vmem:[%s355_s1] sm:$0xff] }
  0x28   :  { %209 = vmatprep.subr.bf16.mxu0 %v283_v0  ;;  %v178_v11 = vmul.f32 -1.442695, %v59_v10 }
  0x29   :  { %219 = vpow2.f32 %v177_v4 }
  0x2b   :  { %211 = vmatpush3.bf16.msra.mxu0 %v189_v5 }
  0x2d   :  { %v149_v19 = vld [vmem:[#allocation3] sm:$0xff] }
  0x33   :  { %v220_v6 = vpop.eup %219 }
  0x34   :  { %v52_v7 = vadd.f32 1.0, %v220_v6 }
  0x36   :  { %221 = vrcp.f32 %v52_v7 }
  0x37   :  { %223 = vpow2.f32 %v178_v11 }
  0x40   :  { %v222_v8 = vpop.eup %221 }
  0x41   :  { %56 = vst.msk [vmem:[#allocation2] sm:$0xff] %vm55_vm2, %v222_v8  ;;  %v224_v12 = vpop.eup %223 }
  0x42   :  { %v63_v13 = vadd.f32 1.0, %v224_v12 }
  0x44   :  { %225 = vrcp.f32 %v63_v13 }
  0x48   :  { %v74_v9 = vld [vmem:[#allocation2] sm:$0xff] }
  0x49   :  { %204 = vmatmul.mubr.msk.f32.vlgmr.msra.gmra.mrb[0].mxu0 %vm55_vm2, %v74_v9 }
  0x4e   :  { %v226_v14 = vpop.eup %225 }
 0x11c   :  { %v145_v15 = vpop.f32.mrb[0].mxu0 }
 0x11d   :  { %v150_v16 = vmul.f32 %v226_v14, %v145_v15  ;;  %v205_v17 = vpop.f32.mrb[1].mxu0 }
 0x11f   :  { %v151_v18 = vsel %vm55_vm2, %v150_v16, 0.0 }
 0x120   :  { %152 = vadd.xlane.f32.xlu0 %v151_v18 }
 0x1ad   :  { %v153_v20 = vpop.xlane.xlu0 %152 }
 0x1ae   :  { %v154_v21 = vadd.f32 %v153_v20, %v149_v19 }
 0x1b0   :  { %156 = vst.msk [vmem:[#allocation3] sm:$0xff] %vm57_vm0, %v154_v21 }
 0x1b7   :  { %v160_v23 = vld [vmem:[#allocation3] sm:$0xff] }
 0x1b8   :  { %v163_v24 = vadd.f32 %v162_v22, %v160_v23 }
 0x1ba   :  { %v180_v25 = vmul.f32 -1.442695, %v163_v24 }
 0x1bc   :  { %227 = vpow2.f32 %v180_v25 }
 0x1c6   :  { %v228_v26 = vpop.eup %227 }
 0x1c7   :  { %v167_v27 = vadd.f32 1.0, %v228_v26 }
 0x1c9   :  { %229 = vrcp.f32 %v167_v27 }
 0x1d3   :  { %v230_v28 = vpop.eup %229 }
 0x1d4   :  { %170 = vst.msk [vmem:[%s358_s4] sm:$0xff] %vm57_vm0, %v230_v28 }
 0x1d5   :  { %175 = vsyncpa [#allocation6], 1 }
 0x1d6   :  { %176 = vsyncpa [#allocation8], 1 }

</bundles_post_ra>
